<compile_context>
chip_gen: v7x
topology: tpu7x:2x2x1
jax: 0.10.0
libtpu: 0.0.40
codegen_flags: <defaults>
</compile_context>

<pallas_src>
import functools

import jax
import jax.numpy as jnp
from jax.experimental import pallas as pl
from jax.experimental.pallas import tpu as pltpu

LANE = 128
BF16_SUBLANE = 16  # bf16 packs two rows per sublane -> batch tiles multiple of 16


def _round_up(x, m):
    return (x + m - 1) // m * m


def actor_kernel(x_ref, w1_ref, w2_ref, w3_ref, bh_ref, ba_ref, o_ref, *,
                 actor_squash, actor_scale):
    # encoder: identity (flat observation already in x_ref); cast f32 -> bf16
    # in-register (avoids a wrapper-side HBM read+write of x per call).
    x = x_ref[...].astype(jnp.bfloat16)       # (TB, obs_dim)

    b1 = bh_ref[0:1, :]                       # (1, F_h) f32
    b2 = bh_ref[1:2, :]                       # (1, F_h) f32
    b3 = ba_ref[...]                          # (1, F_a) f32

    # torso layer 1: Linear + tanh (bf16 MXU matmul, f32 accumulate, f32 tanh)
    h1 = jnp.tanh(
        jnp.dot(x, w1_ref[...], preferred_element_type=jnp.float32) + b1)
    # torso layer 2: Linear + tanh
    h2 = jnp.tanh(
        jnp.dot(h1.astype(jnp.bfloat16), w2_ref[...],
                preferred_element_type=jnp.float32) + b2)
    # head: Linear (narrow F_a output width)
    pred = jnp.dot(h2.astype(jnp.bfloat16), w3_ref[...],
                   preferred_element_type=jnp.float32) + b3
    if actor_squash:
        pred = jnp.tanh(pred) * actor_scale
    o_ref[...] = pred.astype(o_ref.dtype)     # bf16 lane-dense store


def prepare_params(params, *, hidden_lane_multiple=LANE):
    """One-time padding + bf16 cast of the actor weights.

    Call once (e.g. after loading / updating the policy), not per forward.
    hidden_lane_multiple: 128 everywhere; 256 can help v6e/v7x's 256-wide MXU
    once the kernel stops being DMA/overhead bound.
    """
    w1, b1, w2, b2, w3, b3 = params
    obs_dim, H = w1.shape
    A = w3.shape[1]
    F_h = _round_up(H, hidden_lane_multiple)
    F_a = _round_up(A, LANE)

    bf16, f32 = jnp.bfloat16, jnp.float32
    w1p = jnp.zeros((obs_dim, F_h), bf16).at[:, :H].set(w1.astype(bf16))
    w2p = jnp.zeros((F_h, F_h), bf16).at[:H, :H].set(w2.astype(bf16))
    w3p = jnp.zeros((F_h, F_a), bf16).at[:H, :A].set(w3.astype(bf16))
    bh = jnp.zeros((2, F_h), f32)
    bh = bh.at[0, :H].set(b1.reshape(-1).astype(f32))
    bh = bh.at[1, :H].set(b2.reshape(-1).astype(f32))
    ba = jnp.zeros((1, F_a), f32).at[0, :A].set(b3.reshape(-1).astype(f32))
    return (w1p, w2p, w3p, bh, ba, obs_dim, H, A)


def actor_forward(x, prepared, *, actor_squash=True, actor_scale=1.0,
                  block_batch=512):
    w1p, w2p, w3p, bh, ba, obs_dim, H, A = prepared
    B, x_obs = x.shape
    assert x_obs == obs_dim
    F_h = w1p.shape[1]
    F_a = w3p.shape[1]

    # Batch tile: multiple of 16 (bf16 sublane packing); capped so the grid has
    # >= 2 steps whenever B allows it (lets "parallel" shard across v7x's 2 TCs).
    tb_cap = _round_up(pl.cdiv(B, 2), BF16_SUBLANE)
    TB = max(BF16_SUBLANE, min(_round_up(block_batch, BF16_SUBLANE), tb_cap))
    grid = (pl.cdiv(B, TB),)

    kernel = functools.partial(actor_kernel, actor_squash=actor_squash,
                               actor_scale=actor_scale)

    # VMEM footprint (double-buffered x/out tiles; weights fetched once but
    # conservatively counted twice) -> explicit limit with headroom so large-H
    # configs stay inside v7x's 64 MiB physical VMEM.
    needed = (2 * TB * obs_dim * 4
              + 2 * (w1p.size + w2p.size + w3p.size) * 2
              + 2 * (bh.size + ba.size) * 4
              + 2 * TB * F_a * 2)
    vmem_limit = min(60 * 1024 * 1024, int(needed * 1.5) + 8 * 1024 * 1024)

    # Per-call traffic only: x (f32 in), weights/biases once, bf16 output.
    n_tanh = B * (2 * F_h + (F_a if actor_squash else 0))
    cost = pl.CostEstimate(
        flops=2 * B * (obs_dim * F_h + F_h * F_h + F_h * F_a),
        transcendentals=n_tanh,
        bytes_accessed=(B * obs_dim * 4
                        + (w1p.size + w2p.size + w3p.size) * 2
                        + (bh.size + ba.size) * 4
                        + B * F_a * 2),
    )

    out = pl.pallas_call(
        kernel,
        out_shape=jax.ShapeDtypeStruct((B, F_a), jnp.bfloat16),
        grid=grid,
        in_specs=[
            pl.BlockSpec((TB, obs_dim), lambda i: (i, 0)),
            # weights / packed biases: constant index_map -> fetched once,
            # VMEM-resident across all batch-grid steps.
            pl.BlockSpec((obs_dim, F_h), lambda i: (0, 0)),
            pl.BlockSpec((F_h, F_h), lambda i: (0, 0)),
            pl.BlockSpec((F_h, F_a), lambda i: (0, 0)),
            pl.BlockSpec((2, F_h), lambda i: (0, 0)),
            pl.BlockSpec((1, F_a), lambda i: (0, 0)),
        ],
        out_specs=pl.BlockSpec((TB, F_a), lambda i: (i, 0)),
        compiler_params=pltpu.CompilerParams(
            dimension_semantics=("parallel",),
            vmem_limit_bytes=vmem_limit),
        cost_estimate=cost,
    )(x, w1p, w2p, w3p, bh, ba)

    return out[:, :A]


def init_linear(key, fan_in, fan_out):
    # PyTorch nn.Linear default init: U(-1/sqrt(fan_in), 1/sqrt(fan_in))
    kw, kb = jax.random.split(key)
    bound = 1.0 / jnp.sqrt(jnp.float32(fan_in))
    w = jax.random.uniform(kw, (fan_in, fan_out), jnp.float32, -bound, bound)
    b = jax.random.uniform(kb, (1, fan_out), jnp.float32, -bound, bound)
    return w, b


def reference_forward_f32(x, params, actor_squash=True, actor_scale=1.0):
    w1, b1, w2, b2, w3, b3 = params
    h1 = jnp.tanh(x @ w1 + b1)
    h2 = jnp.tanh(h1 @ w2 + b2)
    pred = h2 @ w3 + b3
    if actor_squash:
        pred = jnp.tanh(pred) * actor_scale
    return pred


def reference_forward_bf16(x, params, actor_squash=True, actor_scale=1.0):
    # Mirrors the kernel's bf16-input / f32-accumulate arithmetic.
    w1, b1, w2, b2, w3, b3 = params
    bf16, f32 = jnp.bfloat16, jnp.float32
    h1 = jnp.tanh(jnp.dot(x.astype(bf16), w1.astype(bf16),
                          preferred_element_type=f32) + b1)
    h2 = jnp.tanh(jnp.dot(h1.astype(bf16), w2.astype(bf16),
                          preferred_element_type=f32) + b2)
    pred = jnp.dot(h2.astype(bf16), w3.astype(bf16),
                   preferred_element_type=f32) + b3
    if actor_squash:
        pred = jnp.tanh(pred) * actor_scale
    return pred


if __name__ == "__main__":
    key = jax.random.PRNGKey(0)
    k_obs, k1, k2, k3 = jax.random.split(key, 4)

    batch, obs_dim, hidden, action_dim = 20, 16, 32, 4

    x = jax.random.normal(k_obs, (batch, obs_dim), jnp.float32)
    w1, b1 = init_linear(k1, obs_dim, hidden)
    w2, b2 = init_linear(k2, hidden, hidden)
    w3, b3 = init_linear(k3, hidden, action_dim)
    params = (w1, b1, w2, b2, w3, b3)

    # One-time weight preparation (padding + bf16 cast) -- not per forward call.
    prepared = jax.block_until_ready(
        jax.tree.map(lambda a: a, prepare_params(params)))

    # batch=20 with TB=16 exercises both a 2-step batch grid (v7x megacore path)
    # and a partial last block handled by BlockSpec OOB masking.
    out = actor_forward(x, prepared, actor_squash=True, actor_scale=1.0)
    out = jax.block_until_ready(out)
    out_f32 = out.astype(jnp.float32)

    ref_bf16 = reference_forward_bf16(x, params)
    ref_f32 = reference_forward_f32(x, params)

    assert out.shape == (batch, action_dim)
    assert out.dtype == jnp.bfloat16
    assert jnp.all(jnp.isfinite(out_f32))
    # bf16 output rounding (~2^-9 on |tanh| <= 1) on top of bf16-matmul inputs.
    assert jnp.allclose(out_f32, ref_bf16, atol=4e-3, rtol=4e-3)
    assert jnp.allclose(out_f32, ref_f32, atol=6e-2, rtol=6e-2)

    print("KERNEL_OK")
</pallas_src>

<mosaic_0001>
module attributes {stable_mosaic.version = 11 : i64} {
  func.func @actor_kernel(%arg0: i32, %arg1: memref<16x16xf32, #tpu.memory_space<vmem>>, %arg2: memref<16x128xbf16, #tpu.memory_space<vmem>>, %arg3: memref<128x128xbf16, #tpu.memory_space<vmem>>, %arg4: memref<128x128xbf16, #tpu.memory_space<vmem>>, %arg5: memref<2x128xf32, #tpu.memory_space<vmem>>, %arg6: memref<1x128xf32, #tpu.memory_space<vmem>>, %arg7: memref<16x128xbf16, #tpu.memory_space<vmem>>) attributes {dimension_semantics = [#tpu.dimension_semantics<parallel>], iteration_bounds = array<i64: 2>, scalar_prefetch = 0 : i64, scratch_operands = 0 : i64, tpu.core_type = #tpu.core_type<tc>, window_params = [{transform_indices = @transform_0, window_bounds = array<i64: 16, 16>}, {pipeline_mode = #tpu.pipeline_mode<synchronous>, transform_indices = @transform_1, window_bounds = array<i64: 16, 128>}, {pipeline_mode = #tpu.pipeline_mode<synchronous>, transform_indices = @transform_2, window_bounds = array<i64: 128, 128>}, {pipeline_mode = #tpu.pipeline_mode<synchronous>, transform_indices = @transform_3, window_bounds = array<i64: 128, 128>}, {pipeline_mode = #tpu.pipeline_mode<synchronous>, transform_indices = @transform_4, window_bounds = array<i64: 2, 128>}, {pipeline_mode = #tpu.pipeline_mode<synchronous>, transform_indices = @transform_5, window_bounds = array<i64: 1, 128>}, {transform_indices = @transform_6, window_bounds = array<i64: 16, 128>}]} {
    %c0 = arith.constant 0 : index
    %c0_0 = arith.constant 0 : index
    %0 = vector.load %arg1[%c0, %c0_0] : memref<16x16xf32, #tpu.memory_space<vmem>>, vector<16x16xf32>
    %1 = arith.truncf %0 : vector<16x16xf32> to vector<16x16xbf16>
    %c0_1 = arith.constant 0 : index
    %c0_2 = arith.constant 0 : index
    %2 = vector.load %arg5[%c0_1, %c0_2] : memref<2x128xf32, #tpu.memory_space<vmem>>, vector<1x128xf32>
    %c1 = arith.constant 1 : index
    %c0_3 = arith.constant 0 : index
    %3 = vector.load %arg5[%c1, %c0_3] : memref<2x128xf32, #tpu.memory_space<vmem>>, vector<1x128xf32>
    %c0_4 = arith.constant 0 : index
    %c0_5 = arith.constant 0 : index
    %4 = vector.load %arg6[%c0_4, %c0_5] : memref<1x128xf32, #tpu.memory_space<vmem>>, vector<1x128xf32>
    %c0_6 = arith.constant 0 : index
    %c0_7 = arith.constant 0 : index
    %5 = vector.load %arg2[%c0_6, %c0_7] : memref<16x128xbf16, #tpu.memory_space<vmem>>, vector<16x128xbf16>
    %cst = arith.constant dense<0.000000e+00> : vector<16x128xf32>
    %6 = tpu.matmul %1, %5, %cst {dimension_numbers = #tpu.dot_dimension_numbers<[1], [0], [0], [1], [0, 0, 1, 1], [], []>} : vector<16x16xbf16>, vector<16x128xbf16>, vector<16x128xf32> -> vector<16x128xf32>
    %7 = vector.broadcast %2 : vector<1x128xf32> to vector<16x128xf32>
    %8 = arith.addf %6, %7 : vector<16x128xf32>
    %9 = math.tanh %8 : vector<16x128xf32>
    %10 = arith.truncf %9 : vector<16x128xf32> to vector<16x128xbf16>
    %c0_8 = arith.constant 0 : index
    %c0_9 = arith.constant 0 : index
    %11 = vector.load %arg3[%c0_8, %c0_9] : memref<128x128xbf16, #tpu.memory_space<vmem>>, vector<128x128xbf16>
    %cst_10 = arith.constant dense<0.000000e+00> : vector<16x128xf32>
    %12 = tpu.matmul %10, %11, %cst_10 {dimension_numbers = #tpu.dot_dimension_numbers<[1], [0], [0], [1], [0, 0, 1, 1], [], []>} : vector<16x128xbf16>, vector<128x128xbf16>, vector<16x128xf32> -> vector<16x128xf32>
    %13 = vector.broadcast %3 : vector<1x128xf32> to vector<16x128xf32>
    %14 = arith.addf %12, %13 : vector<16x128xf32>
    %15 = math.tanh %14 : vector<16x128xf32>
    %16 = arith.truncf %15 : vector<16x128xf32> to vector<16x128xbf16>
    %c0_11 = arith.constant 0 : index
    %c0_12 = arith.constant 0 : index
    %17 = vector.load %arg4[%c0_11, %c0_12] : memref<128x128xbf16, #tpu.memory_space<vmem>>, vector<128x128xbf16>
    %cst_13 = arith.constant dense<0.000000e+00> : vector<16x128xf32>
    %18 = tpu.matmul %16, %17, %cst_13 {dimension_numbers = #tpu.dot_dimension_numbers<[1], [0], [0], [1], [0, 0, 1, 1], [], []>} : vector<16x128xbf16>, vector<128x128xbf16>, vector<16x128xf32> -> vector<16x128xf32>
    %19 = vector.broadcast %4 : vector<1x128xf32> to vector<16x128xf32>
    %20 = arith.addf %18, %19 : vector<16x128xf32>
    %21 = math.tanh %20 : vector<16x128xf32>
    %cst_14 = arith.constant 1.000000e+00 : f32
    %22 = vector.broadcast %cst_14 : f32 to vector<16x128xf32>
    %23 = arith.mulf %21, %22 : vector<16x128xf32>
    %24 = arith.truncf %23 : vector<16x128xf32> to vector<16x128xbf16>
    %c0_15 = arith.constant 0 : index
    %c0_16 = arith.constant 0 : index
    %25 = vector.load %arg7[%c0_15, %c0_16] : memref<16x128xbf16, #tpu.memory_space<vmem>>, vector<16x128xbf16>
    tpu.vector_store %arg7[%c0_15, %c0_16], %24 {strides = array<i32>} : memref<16x128xbf16, #tpu.memory_space<vmem>>, vector<16x128xbf16>,
    return
  }
  func.func @transform_0(%arg0: i32) -> (i32, i32) {
    %c0_i32 = arith.constant 0 : i32
    %c0_i32_0 = arith.constant 0 : i32
    return %arg0, %c0_i32 : i32, i32
  }
  func.func @transform_1(%arg0: i32) -> (i32, i32) {
    %c0_i32 = arith.constant 0 : i32
    %c0_i32_0 = arith.constant 0 : i32
    %c0_i32_1 = arith.constant 0 : i32
    return %c0_i32, %c0_i32_0 : i32, i32
  }
  func.func @transform_2(%arg0: i32) -> (i32, i32) {
    %c0_i32 = arith.constant 0 : i32
    %c0_i32_0 = arith.constant 0 : i32
    %c0_i32_1 = arith.constant 0 : i32
    return %c0_i32, %c0_i32_0 : i32, i32
  }
  func.func @transform_3(%arg0: i32) -> (i32, i32) {
    %c0_i32 = arith.constant 0 : i32
    %c0_i32_0 = arith.constant 0 : i32
    %c0_i32_1 = arith.constant 0 : i32
    return %c0_i32, %c0_i32_0 : i32, i32
  }
  func.func @transform_4(%arg0: i32) -> (i32, i32) {
    %c0_i32 = arith.constant 0 : i32
    %c0_i32_0 = arith.constant 0 : i32
    %c0_i32_1 = arith.constant 0 : i32
    return %c0_i32, %c0_i32_0 : i32, i32
  }
  func.func @transform_5(%arg0: i32) -> (i32, i32) {
    %c0_i32 = arith.constant 0 : i32
    %c0_i32_0 = arith.constant 0 : i32
    %c0_i32_1 = arith.constant 0 : i32
    return %c0_i32, %c0_i32_0 : i32, i32
  }
  func.func @transform_6(%arg0: i32) -> (i32, i32) {
    %c0_i32 = arith.constant 0 : i32
    %c0_i32_0 = arith.constant 0 : i32
    return %arg0, %c0_i32 : i32, i32
  }
}

</mosaic_0001>

<bundles_post_ra>
// kernel: tpu_custom_call.1
= control target key start
LH: loop header
LB: loop body
LE: loop exit
PB: predicated region body
PF: predicated region fallthrough
CT: control target
= control target key end

     0   :  { %11 = vsyncpa [#allocation3], 0  ;;  %s1320_s0 = inlined_call_operand.vmem [shape: f32[20,16], index: 0, kind: input, shape index: {}]   ;;  %s1321_s1 = inlined_call_operand.vmem [shape: bf16[16,128], index: 1, kind: input, shape index: {}]   ;;  %s1322_s2 = inlined_call_operand.hbm [shape: bf16[128,128], index: 2, kind: input, shape index: {}]   ;;  %s1323_s3 = inlined_call_operand.hbm [shape: bf16[128,128], index: 3, kind: input, shape index: {}]   ;;  %s1324_s4 = inlined_call_operand.vmem [shape: f32[2,128], index: 4, kind: input, shape index: {}]   ;;  %s1325_s5 = inlined_call_operand.vmem [shape: f32[1,128], index: 5, kind: input, shape index: {}]   ;;  %s1326_s6 = inlined_call_operand.hbm [shape: bf16[20,128], index: 6, kind: output, shape index: {}]  }
   0x1   :  { %12 = vsyncpa [#allocation6], 0 }
   0x2   :  { %13 = vsyncpa [#allocation4], 0 }
   0x3   :  { %15 = vsyncpa [#allocation4 + $0x1], 0  ;;  %s1096_s21 = smov 0   ;;  %s1098_s22 = smov 0  }
   0x4   :  { %s1100_s23 = smov 0   ;;  %s1102_s24 = smov 0  }
   0x5 LB: > { %s1117_s25 = sadd.s32 4294967295, %s1050_s24   ;;  %s713_s26 = sadd.s32 4294967294, %s1050_s24   ;;  %s1050_s24 = sphi %s1102_s24, %s1343_s24   ;;  %s1046_s23 = sphi %s1100_s23, %s1342_s23   ;;  %s1042_s22 = sphi %s1098_s22, %s1341_s22   ;;  %s1038_s21 = sphi %s1096_s21, %s1340_s21  }
   0x6   : > { %s1121_s27 = sadd.s32 1, %s1050_s24   ;;  %s159_s28 = sadd.s32 1, %s1046_s23 }
   0x7   : > { %s156_s29 = ssub.s32 %s1050_s24, %s1121_s27  ;;  %p169_p0 = scmp.ne.s32.totalorder %s1046_s23, %s1042_s22 }
   0x8   : > { %p157_p1 = scmp.eq.s32.totalorder %s156_s29, 0  ;;  %p170_p2 = scmp.eq.s32.totalorder %s1117_s25, 1 }
   0x9   : > { %p175_p3 = scmp.ne.s32.totalorder %s1042_s22, %s1038_s21  ;;  %p176_p4 = scmp.eq.s32.totalorder %s713_s26, 1 }
   0xa   : > { %s1132_s30 = scalar_select %p157_p1, %s1046_s23, %s159_s28  }
   0xb   : > { %p1134_p5 = por %p170_p2, %p169_p0  ;;  %p1138_p6 = por %p176_p4, %p175_p3 }
   0xc   : > { %p714_p7 = scmp.ge.s32.totalorder %s1050_s24, 1  ;;  %p183_p8 = scmp.lt.s32.totalorder %s1050_s24, 3 }
   0xd   : > { %s1329_s7 = scalar_select %p1134_p5, 1, 0 }
   0xe   : > { %s1330_s8 = scalar_select %p1138_p6, 1, 0 }
   0xf   : > { %p1327_p9 = scmp.eq.s32.totalorder %s1117_s25, 0  ;;  %p1145_p10 = pnand %p714_p7, %p183_p8 }
  0x10   : > { %s1052_s10 = smov [#allocation2]   ;;  %s1053_s13 = smov [#allocation5]  }
  0x11   : > { %s1331_s9 = scalar_select %p1145_p10, 1, 0 }
  0x12   : > { %s198_s11 = sshll.u32 %s1052_s10, 4  ;;  %p839_p11 = pneg %p1145_p10  ;;  %s199_s11 = int_to_ptr.vmem [resolvable:$true] %s198_s11 }
  0x13   : > { %s211_s14 = sshll.u32 %s1053_s13, 4  ;;  %s924_s17 = scalar_lea.hbm %s1322_s2, 1024  ;;  %s1157_s14 = int_to_ptr.vmem [resolvable:$true] %s211_s14 }
  0x14   : > { %p1153_p12 = pnand %p1327_p9, %p839_p11  ;;  %p925_p13 = scmp.ne.s32.totalorder %s1322_s2, %s924_s17 }
  0x15   : > { %p931_p3 = scmp.lt.u32.totalorder %s924_s17, %s1322_s2 }
  0x16   : > { %p926_p0 = pneg %p1153_p12 }
  0x18   : > { %p927_p1 = pnand %p926_p0, %p925_p13 }
  0x1a   : > { %p928_p2 = pneg %p927_p1 }
  0x1c   : > { %p933_p4 = pnand %p931_p3, %p928_p2 }
  0x1e   : > { %936 = shalt.err (!%p933_p4)
}
  0x1f   : > { %s937_s28 = scalar_lea.vmem %s199_s11, 1024  ;;  %p945_p9 = scmp.lt.s32.totalorder %s199_s11, %s199_s11 }
  0x20   : > { %p938_p7 = scmp.ne.s32.totalorder %s199_s11, %s937_s28  ;;  %p946_p6 = scmp.lt.s32.totalorder %s937_s28, %s937_s28 }
  0x22   : > { %p940_p8 = pnand %p938_p7, %p926_p0  ;;  %p947_p5 = por %p946_p6, %p945_p9 }
  0x24   : > { %p941_p11 = pneg %p940_p8 }
  0x26   : > { %p948_p10 = pnand %p947_p5, %p941_p11 }
  0x28   : > { %951 = shalt.err (!%p948_p10)
}
  0x29   : > { %s1054_s29 = smov 64   ;;  %s1055_s10 = smov 4  }
  0x2a   : > { %842 = dma.hbm_to_vmem [thread:$0]  (!%p1153_p12), %s1322_s2, 1024, %s199_s11, [#allocation3], %s1054_s29, %s1054_s29, %s1055_s10  }
  0x2b   : > { %s952_s18 = scalar_lea.hbm %s1323_s3, 1024 }
  0x2c   : > { %p953_p13 = scmp.ne.s32.totalorder %s1323_s3, %s952_s18  ;;  %p959_p9 = scmp.lt.u32.totalorder %s952_s18, %s1323_s3 }
  0x2e   : > { %p955_p5 = pnand %p953_p13, %p926_p0 }
  0x30   : > { %p956_p6 = pneg %p955_p5 }
  0x32   : > { %p961_p10 = pnand %p959_p9, %p956_p6 }
  0x34   : > { %964 = shalt.err (!%p961_p10)
}
  0x35   : > { %s965_s11 = scalar_lea.vmem %s1157_s14, 1024  ;;  %p973_p4 = scmp.lt.s32.totalorder %s1157_s14, %s1157_s14 }
  0x36   : > { %p966_p1 = scmp.ne.s32.totalorder %s1157_s14, %s965_s11  ;;  %p974_p7 = scmp.lt.s32.totalorder %s965_s11, %s965_s11 }
  0x38   : > { %p968_p2 = pnand %p966_p1, %p926_p0  ;;  %p975_p8 = por %p974_p7, %p973_p4 }
  0x3a   : > { %p969_p3 = pneg %p968_p2 }
  0x3c   : > { %p976_p11 = pnand %p975_p8, %p969_p3 }
  0x3e   : > { %979 = shalt.err (!%p976_p11)
}
  0x3f   : > { %845 = dma.hbm_to_vmem [thread:$0]  (!%p1153_p12), %s1323_s3, 1024, %s1157_s14, [#allocation6], %s1054_s29, %s1054_s29, %s1055_s10  }
  0x40   : > { %p1333_p13 = scmp.ne.s32.totalorder %s1331_s9, 0 }
  0x41   : > { %p1334_p5 = scmp.eq.s32.totalorder (!%p1333_p13), %s1117_s25, 0 }
  0x42   : > { %250 = sbr.rel (%p1333_p13) target bundleno = 804 (0x324), region = 44 }
  0x49   : > { %1025 = dma.done.wait (%p1334_p5), [#allocation3], 1024   ;;  %p1335_p0 = pmov %p1334_p5 }
  0x4b   : > { %1027 = vsyncadd (%p1335_p0), [#allocation3], 4294966272  ;;  %p1336_p6 = pmov %p1335_p0 }
  0x4c   : > { %p1337_p9 = pmov %p1335_p0 }
  0x4d   : > { %1029 = dma.done.wait (%p1336_p6), [#allocation6], 1024  }
  0x4e   : > { %1031 = vsyncadd (%p1337_p9), [#allocation6], 4294966272  ;;  %s1217_s12 = sshll.u32 %s1117_s25, 1  ;;  %v1056_v0 = vmov 0.0   ;;  %vm1057_vm0 = vmmov 0   ;;  %v895_v1 = vld [vmem:[%s1321_s1] sm:$0xff]  }
  0x4f   : > { %784 = vmatprep.subr.bf16.mxu0 %v1056_v0  ;;  %786 = vmatprep.mubr.msk.bf16.mxu0 %vm1057_vm0, %v1056_v0  ;;  %p293_p12 = scmp.lt.s32.totalorder %s1217_s12, 2  ;;  %vm326_vm1 = vcmask 130048   ;;  %v896_v5 = vld [vmem:[#allocation2] sm:$0xff]   ;;  %v897_v6 = vld [vmem:[#allocation2 + $0x8] sm:$0xff]   ;;  %v898_v7 = vld [vmem:[#allocation2 + $0x10] sm:$0xff]   ;;  %s285_s11 = sand.u32 1, %s1042_s22  }
  0x50   : > { %790 = vmatprep.subr.bf16.mxu1 %v1056_v0  ;;  %806 = vmatprep.mubr.msk.bf16.mxu1 %vm1057_vm0, %v1056_v0  ;;  %v899_v8 = vld [vmem:[#allocation2 + $0x18] sm:$0xff]   ;;  %v900_v9 = vld [vmem:[#allocation2 + $0x20] sm:$0xff]   ;;  %v901_v10 = vld [vmem:[#allocation2 + $0x28] sm:$0xff]   ;;  %s1260_s29 = scalar_lea.sflag [#allocation4], %s285_s11  ;;  %p1338_p10 = scmp.ne.s32.totalorder %s1329_s7, 0 }
  0x51   : > { %s294_s9 = scalar_select %p293_p12, %s1217_s12, 2  ;;  %785 = vmatpush3.bf16.msra.mxu0 %v895_v1  ;;  %791 = vmatpush3.bf16.msra.mxu1 %v896_v5  ;;  %v902_v11 = vld [vmem:[#allocation2 + $0x30] sm:$0xff]   ;;  %v903_v12 = vld [vmem:[#allocation2 + $0x38] sm:$0xff]   ;;  %v904_v13 = vld [vmem:[#allocation5] sm:$0xff]  }
  0x52   : > { %810 = vmatprep.subr.bf16.mxu0 %v1056_v0  ;;  %792 = vmatprep.subr.bf16.mxu1 %v1056_v0  ;;  %v905_v14 = vld [vmem:[#allocation5 + $0x8] sm:$0xff]   ;;  %v906_v15 = vld [vmem:[#allocation5 + $0x10] sm:$0xff]   ;;  %v907_v16 = vld [vmem:[#allocation5 + $0x18] sm:$0xff]   ;;  %s618_s10 = ssub.s32 (%p1338_p10), 3, %s1217_s12 }
  0x53   : > { %s723_s14 = sshll.u32 %s294_s9, 3  ;;  %v724_v17 = vld [vmem:[%s1324_s4] ss:$0 sm:$0xff]  ;;  %v909_v28 = vld [vmem:[#allocation5 + $0x28] sm:$0xff]   ;;  %v910_v29 = vld [vmem:[#allocation5 + $0x30] sm:$0xff]   ;;  %s721_s9 = sshll.u32 %s285_s11, 3 }
  0x54   : > { %s296_s16 = scalar_lea.vmem %s1320_s0, %s723_s14  ;;  %v908_v27 = vld [vmem:[#allocation5 + $0x20] sm:$0xff]   ;;  %v911_v30 = vld [vmem:[#allocation5 + $0x38] sm:$0xff]   ;;  %s287_s14 = scalar_lea.vmem [#allocation7], %s721_s9 }
  0x55   : > { %v308_v2 = vld [vmem:[%s296_s16] sm:$0xff]  ;;  %v309_v3 = vld [vmem:[%s296_s16 + $0x8] sm:$0xff]  ;;  %793 = vmatpush3.bf16.msra.mxu1 %v897_v6  ;;  %p619_p1 = scmp.lt.s32.totalorder (%p1338_p10), %s618_s10, 2 }
  0x56   : > { %v310_v4 = vpack.c.bf16 %v309_v3, %v308_v2  ;;  %794 = vmatprep.subr.bf16.mxu1 %v1056_v0  ;;  %v727_v31 = vld [vmem:[%s1324_s4 + $0x1] ss:$0 sm:$0xff]  ;;  %v736_v41 = vld [vmem:[%s1325_s5] ss:$0 sm:$0xff] }
  0x58   : > { %787 = vmatmul.mubr.msk.bf16.vlgmr.msra.gmra.mrb[0].mxu0 %vm326_vm1, %v310_v4 }
  0x59   : > { %826 = vmatprep.mubr.msk.bf16.mxu0 %vm1057_vm0, %v1056_v0  ;;  %795 = vmatpush3.bf16.msra.mxu1 %v898_v7 }
  0x5a   : > { %796 = vmatprep.subr.bf16.mxu1 %v1056_v0  ;;  %811 = vmatpush3.bf16.msra.mxu0 %v904_v13 }
  0x5b   : > { %812 = vmatprep.subr.bf16.mxu0 %v1056_v0 }
  0x5d   : > { %797 = vmatpush3.bf16.msra.mxu1 %v899_v8 }
  0x5e   : > { %798 = vmatprep.subr.bf16.mxu1 %v1056_v0  ;;  %813 = vmatpush3.bf16.msra.mxu0 %v905_v14 }
  0x5f   : > { %814 = vmatprep.subr.bf16.mxu0 %v1056_v0 }
  0x61   : > { %799 = vmatpush3.bf16.msra.mxu1 %v900_v9 }
  0x62   : > { %800 = vmatprep.subr.bf16.mxu1 %v1056_v0  ;;  %815 = vmatpush3.bf16.msra.mxu0 %v906_v15 }
  0x63   : > { %816 = vmatprep.subr.bf16.mxu0 %v1056_v0 }
  0x65   : > { %801 = vmatpush3.bf16.msra.mxu1 %v901_v10 }
  0x66   : > { %802 = vmatprep.subr.bf16.mxu1 %v1056_v0  ;;  %817 = vmatpush3.bf16.msra.mxu0 %v907_v16 }
  0x67   : > { %818 = vmatprep.subr.bf16.mxu0 %v1056_v0 }
  0x69   : > { %803 = vmatpush3.bf16.msra.mxu1 %v902_v11 }
  0x6a   : > { %804 = vmatprep.subr.bf16.mxu1 %v1056_v0  ;;  %819 = vmatpush3.bf16.msra.mxu0 %v908_v27 }
  0x6b   : > { %820 = vmatprep.subr.bf16.mxu0 %v1056_v0 }
  0x6d   : > { %805 = vmatpush3.bf16.msra.mxu1 %v903_v12 }
  0x6e   : > { %821 = vmatpush3.bf16.msra.mxu0 %v909_v28 }
  0x6f   : > { %822 = vmatprep.subr.bf16.mxu0 %v1056_v0 }
  0x72   : > { %823 = vmatpush3.bf16.msra.mxu0 %v910_v29 }
  0x73   : > { %824 = vmatprep.subr.bf16.mxu0 %v1056_v0 }
  0x76   : > { %825 = vmatpush3.bf16.msra.mxu0 %v911_v30 }
 0x12b   : > { %v364_v18 = vpop.f32.mrb[0].mxu0 }
 0x12c   : > { %v365_v19 = vadd.f32 %v724_v17, %v364_v18  ;;  %v788_v20 = vpop.f32.mrb[1].mxu0 }
 0x12d   : > { %v367_v21 = vpop.f32.mrb[2].mxu0 }
 0x12e   : > { %v368_v22 = vadd.f32 %v724_v17, %v367_v21  ;;  %v789_v23 = vpop.f32.mrb[3].mxu0  ;;  %912 = vtanh.f32 %v365_v19 }
 0x130   : > { %914 = vtanh.f32 %v368_v22 }
 0x138   : > { %v913_v24 = vpop.eup %912 }
 0x13a   : > { %v915_v25 = vpop.eup %914 }
 0x13b   : > { %v373_v26 = vpack.c.bf16 %v915_v25, %v913_v24 }
 0x13d   : > { %807 = vmatmul.mubr.bf16.vlgmr.msra.gmra.mrb[0].mxu1 %v373_v26 }
 0x210   : > { %v476_v32 = vpop.f32.mrb[0].mxu1 }
 0x211   : > { %v477_v33 = vadd.f32 %v727_v31, %v476_v32  ;;  %v808_v34 = vpop.f32.mrb[1].mxu1 }
 0x212   : > { %v479_v35 = vpop.f32.mrb[2].mxu1 }
 0x213   : > { %v480_v36 = vadd.f32 %v727_v31, %v479_v35  ;;  %v809_v37 = vpop.f32.mrb[3].mxu1  ;;  %916 = vtanh.f32 %v477_v33 }
 0x215   : > { %918 = vtanh.f32 %v480_v36 }
 0x21d   : > { %v917_v38 = vpop.eup %916 }
 0x21f   : > { %v919_v39 = vpop.eup %918 }
 0x220   : > { %v485_v40 = vpack.c.bf16 %v919_v39, %v917_v38 }
 0x222   : > { %827 = vmatmul.mubr.bf16.vlgmr.msra.gmra.mrb[4].mxu0 %v485_v40 }
 0x2f5   : > { %v590_v42 = vpop.f32.mrb[4].mxu0 }
 0x2f6   : > { %v591_v43 = vadd.f32 %v736_v41, %v590_v42  ;;  %v828_v44 = vpop.f32.mrb[5].mxu0 }
 0x2f7   : > { %v593_v45 = vpop.f32.mrb[6].mxu0 }
 0x2f8   : > { %v594_v46 = vadd.f32 %v736_v41, %v593_v45  ;;  %v829_v47 = vpop.f32.mrb[7].mxu0  ;;  %920 = vtanh.f32 %v591_v43 }
 0x2fa   : > { %922 = vtanh.f32 %v594_v46 }
 0x301   : > { %616 = sbr.rel (!%p1338_p10) target bundleno = 804 (0x324), region = 56 }
 0x302   : > { %v921_v48 = vpop.eup %920 }
 0x304   : > { %v923_v49 = vpop.eup %922 }
 0x305   : > { %v762_v50 = vpack.c.bf16 %v923_v49, %v921_v48 }
 0x307   : > { %763 = vst [vmem:[%s287_s14] sm:$0xff] %v762_v50  }
 0x308   : > { %s1345_s10 = smov (!%p619_p1, %s618_s10), 2 }
 0x309   : > { %s1265_s16 = sshll.u32 %s1345_s10, 6 }
 0x30a   : > { %s623_s17 = ssub.s32 128, %s1265_s16 }
 0x30b   : > { %624 = vsyncadd %s1260_s29, %s623_s17  ;;  %p750_p2 = scmp.ne.s32.totalorder %s1265_s16, 0  ;;  %s758_s18 = sshll.u32 %s1117_s25, 7 }
 0x30c   : > { %s1274_s7 = scalar_lea.hbm %s1326_s6, %s758_s18  ;;  %s629_s26 = sshll.u32 %s287_s14, 4  ;;  %s1276_s26 = int_to_ptr.vmem [resolvable:$true] %s629_s26 }
 0x30d   : > { %s980_s12 = scalar_lea.vmem %s1276_s26, %s1265_s16  ;;  %s1058_s28 = smov [#allocation7]  }
 0x30e   : > { %p981_p3 = scmp.ne.s32.totalorder %s1276_s26, %s980_s12  ;;  %s984_s11 = sshll.u32 %s1058_s28, 4  ;;  %s985_s11 = int_to_ptr.vmem [resolvable:$false] %s984_s11 }
 0x30f   : > { %s986_s25 = scalar_lea.vmem %s985_s11, 256  ;;  %p987_p8 = scmp.lt.s32.totalorder %s1276_s26, %s985_s11 }
 0x310   : > { %p982_p4 = pnand %p981_p3, %p750_p2  ;;  %p988_p11 = scmp.lt.s32.totalorder %s986_s25, %s980_s12 }
 0x312   : > { %p983_p7 = pneg %p982_p4  ;;  %p989_p13 = por %p988_p11, %p987_p8 }
 0x314   : > { %p990_p5 = pnand %p989_p13, %p983_p7 }
 0x316   : > { %993 = shalt.err (!%p990_p5)
}
 0x317   : > { %s994_s13 = scalar_lea.hbm %s1274_s7, %s1265_s16  ;;  %s998_s14 = scalar_lea.hbm %s1326_s6, 192 }
 0x318   : > { %p995_p0 = scmp.ne.s32.totalorder %s1274_s7, %s994_s13  ;;  %p999_p12 = scmp.lt.u32.totalorder %s1274_s7, %s1326_s6 }
 0x319   : > { %p1000_p10 = scmp.lt.u32.totalorder %s998_s14, %s994_s13  ;;  %p1002_p3 = scmp.lt.u32.totalorder %s994_s13, %s1274_s7 }
 0x31a   : > { %p996_p6 = pnand %p995_p0, %p750_p2 }
 0x31b   : > { %p1001_p1 = por %p1000_p10, %p999_p12 }
 0x31c   : > { %p997_p9 = pneg %p996_p6 }
 0x31d   : > { %p1003_p4 = por %p1002_p3, %p1001_p1 }
 0x31f   : > { %p1004_p7 = pnand %p1003_p4, %p997_p9 }
 0x321   : > { %1007 = shalt.err (!%p1004_p7)
}
 0x322   : > { %s1059_s18 = smov 64   ;;  %s1060_s19 = smov 4  }
 0x323   : > { %635 = dma.vmem_to_hbm [thread:$0]  (%p750_p2), %s1276_s26, %s1265_s16, %s1274_s7, %s1260_s29, %s1059_s18, %s1059_s18, %s1060_s19  }
 0x324 PF: > { %p854_p8 = scmp.ge.s32.totalorder %s1050_s24, 2  ;;  %s644_s20 = sand.u32 1, %s1038_s21  }
 0x325   : > { %p1339_p11 = scmp.ne.s32.totalorder %s1330_s8, 0  ;;  %s645_s12 = scalar_lea.sflag [#allocation4], %s644_s20 }
 0x327   : > { %p847_p13 = pnand %p854_p8, %p1339_p11 }
 0x329   : > { %1033 = dma.done.wait (!%p847_p13), %s645_s12, 128  }
 0x32a   : > { %1035 = vsyncadd (!%p847_p13), %s645_s12, 4294967168  ;;  %p18_p5 = scmp.ge.s32.totalorder %s1121_s27, 4   ;;  %s1340_s21 = smov %s1042_s22 }
 0x32b   : > { %s1341_s22 = smov %s1046_s23  ;;  %s1342_s23 = smov %s1132_s30 }
 0x32c   : > { %s1343_s24 = smov %s1121_s27  ;;  %20 = sbr.rel (!%p18_p5) target bundleno = 5 (0x5), region = 88 }
 0x333   :  { %650 = vsyncpa [#allocation3], 1 }
 0x334   :  { %652 = vsyncpa [#allocation3 + $0x1], 1 }
 0x335   :  { %653 = vsyncpa [#allocation6], 1 }
 0x336   :  { %654 = vsyncpa [#allocation4], 1 }
 0x337   :  { %656 = vsyncpa [#allocation4 + $0x1], 1 }

</bundles_post_ra>
